<compile_context>
chip_gen: v6e
topology: v6e:2x2x1
jax: 0.10.0
libtpu: 0.0.40
codegen_flags: <defaults>
</compile_context>

<pallas_src>
import functools

import jax
import jax.numpy as jnp
from jax.experimental import pallas as pl
from jax.experimental.pallas import tpu as pltpu


def _temporal_kernel(te_ref, tp_ref, trp_ref,
                     wte_ref, wtp_ref, blin_ref,
                     wcv_ref, bcv_ref,
                     out_ref, *, W, pad):
    """Single-step kernel; all refs are full arrays resident in VMEM.

    te_ref, tp_ref : (B, C, HW)           flattened NCHW inputs to the Linears
    trp_ref        : (B, C, HW + 2*pad)   flattened TR_pre, zero-padded on lanes
    wte_ref/wtp_ref: (HW, HW)             block-diagonal kron(I_H, W_lin^T)
    blin_ref       : (1, HW)              tiled (b_TE + b_Tprev)
    wcv_ref        : (9, C, C)            conv taps (index = ky*3 + kx), (Cout, Cin)
    bcv_ref        : (C, 1)               conv bias
    out_ref        : (B, C, HW)
    """
    B, C, HW = te_ref.shape

    # x-coordinate (column within a row of width W) of every lane.
    xi = jax.lax.broadcasted_iota(jnp.int32, (1, HW), 1) % W

    wte = wte_ref[...]
    wtp = wtp_ref[...]
    blin = blin_ref[...]
    bcv = bcv_ref[...]

    for b in range(B):  # B is tiny & static: unrolled
        # ---- Linear branch: width contraction via block-diagonal weights,
        #      stays lane-dense in (C, HW). ---------------------------------
        z = (jnp.dot(te_ref[b], wte, preferred_element_type=jnp.float32)
             + jnp.dot(tp_ref[b], wtp, preferred_element_type=jnp.float32)
             + blin)                              # (C, HW)
        at = jax.nn.sigmoid(z)                    # EUP
        t = jnp.tanh(z)                           # EUP

        # ---- Conv branch: 3x3, padding=1, as 9 shifted (C,C)@(C,HW) matmuls.
        trp_b = trp_ref[b]                        # (C, HW + 2*pad)
        acc = jnp.zeros((C, HW), jnp.float32)
        for ky in range(3):
            dy = ky - 1
            for kx in range(3):
                dx = kx - 1
                s = dy * W + dx
                shifted = trp_b[:, pad + s: pad + s + HW]   # (C, HW)
                # zero sources that wrapped across a row boundary
                if dx == 1:
                    shifted = jnp.where(xi < W - 1, shifted, 0.0)
                elif dx == -1:
                    shifted = jnp.where(xi >= 1, shifted, 0.0)
                acc = acc + jnp.dot(wcv_ref[ky * 3 + kx], shifted,
                                    preferred_element_type=jnp.float32)
        att = jnp.tanh(acc + bcv)                 # (C, HW)

        # ---- Fusion + lane-dense (full 128-lane) store --------------------
        out_ref[b] = ((t + att) * at).astype(out_ref.dtype)


def temporal_module(TE, T_prev, TR_pre, params):
    """TE, T_prev, TR_pre: NCHW (B, C, H, W) with C == W == feature_size."""
    B, C, H, W = TE.shape
    assert T_prev.shape == TE.shape and TR_pre.shape == TE.shape
    HW = H * W
    pad = W + 1                                   # covers flat shifts up to +-(W+1)

    # Pure reshapes (no transposes): NCHW -> (B, C, H*W)
    te_flat = TE.reshape(B, C, HW)
    tp_flat = T_prev.reshape(B, C, HW)
    tr_flat = TR_pre.reshape(B, C, HW)
    tr_pad = jnp.pad(tr_flat, ((0, 0), (0, 0), (pad, pad)))

    f32 = jnp.float32
    w_te = params["w_te"].astype(f32)             # (F, F) Linear weight (out, in)
    w_tp = params["w_tp"].astype(f32)
    b_lin = (params["b_te"] + params["b_tp"]).astype(f32)    # (F,)
    w_cv = params["w_conv"].astype(f32)           # (C, C, 3, 3) OIHW
    b_cv = params["b_conv"].astype(f32)           # (C,)

    # Width-axis Linear as a block-diagonal (HW, HW) matmul weight.
    eye_h = jnp.eye(H, dtype=f32)
    big_w_te = jnp.kron(eye_h, w_te.T)            # (HW, HW)
    big_w_tp = jnp.kron(eye_h, w_tp.T)
    b_lin_flat = jnp.tile(b_lin, H).reshape(1, HW)

    # Conv taps: tap (ky, kx) -> (Cout, Cin)
    w_cv9 = jnp.transpose(w_cv, (2, 3, 0, 1)).reshape(9, C, C)
    b_cvc = b_cv.reshape(C, 1)

    kernel = functools.partial(_temporal_kernel, W=W, pad=pad)

    out_flat = pl.pallas_call(
        kernel,
        out_shape=jax.ShapeDtypeStruct((B, C, HW), TE.dtype),
        grid=(1,),                                # whole (tiny) problem in one step
        in_specs=[
            pl.BlockSpec((B, C, HW), lambda i: (0, 0, 0)),
            pl.BlockSpec((B, C, HW), lambda i: (0, 0, 0)),
            pl.BlockSpec((B, C, HW + 2 * pad), lambda i: (0, 0, 0)),
            pl.BlockSpec((HW, HW), lambda i: (0, 0)),
            pl.BlockSpec((HW, HW), lambda i: (0, 0)),
            pl.BlockSpec((1, HW), lambda i: (0, 0)),
            pl.BlockSpec((9, C, C), lambda i: (0, 0, 0)),
            pl.BlockSpec((C, 1), lambda i: (0, 0)),
        ],
        out_specs=pl.BlockSpec((B, C, HW), lambda i: (0, 0, 0)),
        compiler_params=pltpu.CompilerParams(
            dimension_semantics=("arbitrary",)),
    )(te_flat, tp_flat, tr_pad, big_w_te, big_w_tp, b_lin_flat, w_cv9, b_cvc)

    return out_flat.reshape(B, C, H, W)


def _reference(TE, T_prev, TR_pre, params):
    """Pure-JAX reference matching the PyTorch module semantics."""
    z = (jnp.einsum("bchw,ow->bcho", TE, params["w_te"]) + params["b_te"]
         + jnp.einsum("bchw,ow->bcho", T_prev, params["w_tp"]) + params["b_tp"])
    at = jax.nn.sigmoid(z)
    t = jnp.tanh(z)
    conv = jax.lax.conv_general_dilated(
        TR_pre, params["w_conv"], window_strides=(1, 1), padding="SAME",
        dimension_numbers=("NCHW", "OIHW", "NCHW"))
    att = jnp.tanh(conv + params["b_conv"].reshape(1, -1, 1, 1))
    return (t + att) * at


if __name__ == "__main__":
    # feature_size F; inputs (B, F, H, F): the Linear acts on the last dim,
    # the conv on channels, so width == channels == F for shape consistency.
    B, F, H = 2, 8, 16
    W = F
    key = jax.random.PRNGKey(0)
    ks = jax.random.split(key, 9)

    TE = jax.random.normal(ks[0], (B, F, H, W), jnp.float32)
    T_prev = jax.random.normal(ks[1], (B, F, H, W), jnp.float32)
    TR_pre = jax.random.normal(ks[2], (B, F, H, W), jnp.float32)

    s = 0.1
    params = {
        "w_te": s * jax.random.normal(ks[3], (F, F), jnp.float32),
        "b_te": s * jax.random.normal(ks[4], (F,), jnp.float32),
        "w_tp": s * jax.random.normal(ks[5], (F, F), jnp.float32),
        "b_tp": s * jax.random.normal(ks[6], (F,), jnp.float32),
        "w_conv": s * jax.random.normal(ks[7], (F, F, 3, 3), jnp.float32),
        "b_conv": s * jax.random.normal(ks[8], (F,), jnp.float32),
    }

    out = jax.block_until_ready(temporal_module(TE, T_prev, TR_pre, params))
    ref = jax.block_until_ready(_reference(TE, T_prev, TR_pre, params))

    assert out.shape == (B, F, H, W)
    max_err = float(jnp.max(jnp.abs(out - ref)))
    assert jnp.allclose(out, ref, atol=5e-5, rtol=5e-5), max_err

    print("KERNEL_OK")
</pallas_src>

<mosaic_0001>
module attributes {stable_mosaic.version = 11 : i64} {
  func.func @_temporal_kernel(%arg0: i32, %arg1: memref<2x8x128xf32, #tpu.memory_space<vmem>>, %arg2: memref<2x8x128xf32, #tpu.memory_space<vmem>>, %arg3: memref<2x8x146xf32, #tpu.memory_space<vmem>>, %arg4: memref<128x128xf32, #tpu.memory_space<vmem>>, %arg5: memref<128x128xf32, #tpu.memory_space<vmem>>, %arg6: memref<1x128xf32, #tpu.memory_space<vmem>>, %arg7: memref<9x8x8xf32, #tpu.memory_space<vmem>>, %arg8: memref<8x1xf32, #tpu.memory_space<vmem>>, %arg9: memref<2x8x128xf32, #tpu.memory_space<vmem>>) attributes {dimension_semantics = [#tpu.dimension_semantics<arbitrary>], iteration_bounds = array<i64: 1>, scalar_prefetch = 0 : i64, scratch_operands = 0 : i64, tpu.core_type = #tpu.core_type<tc>, window_params = [{pipeline_mode = #tpu.pipeline_mode<synchronous>, transform_indices = @transform_0, window_bounds = array<i64: 2, 8, 128>}, {pipeline_mode = #tpu.pipeline_mode<synchronous>, transform_indices = @transform_1, window_bounds = array<i64: 2, 8, 128>}, {pipeline_mode = #tpu.pipeline_mode<synchronous>, transform_indices = @transform_2, window_bounds = array<i64: 2, 8, 146>}, {pipeline_mode = #tpu.pipeline_mode<synchronous>, transform_indices = @transform_3, window_bounds = array<i64: 128, 128>}, {pipeline_mode = #tpu.pipeline_mode<synchronous>, transform_indices = @transform_4, window_bounds = array<i64: 128, 128>}, {pipeline_mode = #tpu.pipeline_mode<synchronous>, transform_indices = @transform_5, window_bounds = array<i64: 1, 128>}, {pipeline_mode = #tpu.pipeline_mode<synchronous>, transform_indices = @transform_6, window_bounds = array<i64: 9, 8, 8>}, {pipeline_mode = #tpu.pipeline_mode<synchronous>, transform_indices = @transform_7, window_bounds = array<i64: 8, 1>}, {pipeline_mode = #tpu.pipeline_mode<synchronous>, transform_indices = @transform_8, window_bounds = array<i64: 2, 8, 128>}]} {
    %0 = tpu.iota {dimensions = array<i32: 1>} : vector<1x128xi32>
    %c8_i32 = arith.constant 8 : i32
    %c0_i32 = arith.constant 0 : i32
    %1 = arith.cmpi eq, %c8_i32, %c0_i32 : i32
    %c1_i32 = arith.constant 1 : i32
    %2 = arith.select %1, %c1_i32, %c8_i32 : i32
    %3 = vector.broadcast %2 : i32 to vector<1x128xi32>
    %4 = arith.remsi %0, %3 : vector<1x128xi32>
    %c0_i32_0 = arith.constant 0 : i32
    %5 = vector.broadcast %c0_i32_0 : i32 to vector<1x128xi32>
    %6 = arith.cmpi ne, %4, %5 : vector<1x128xi32>
    %c0_i32_1 = arith.constant 0 : i32
    %7 = vector.broadcast %c0_i32_1 : i32 to vector<1x128xi32>
    %8 = arith.cmpi slt, %4, %7 : vector<1x128xi32>
    %c0_i32_2 = arith.constant 0 : i32
    %9 = arith.cmpi slt, %2, %c0_i32_2 : i32
    %10 = vector.broadcast %9 : i1 to vector<1x128xi1>
    %11 = vector.broadcast %10 : vector<1x128xi1> to vector<1x128xi1>
    %12 = arith.xori %8, %11 : vector<1x128xi1>
    %13 = arith.andi %12, %6 : vector<1x128xi1>
    %14 = vector.broadcast %2 : i32 to vector<1x128xi32>
    %15 = arith.addi %4, %14 : vector<1x128xi32>
    %16 = arith.select %13, %15, %4 : vector<1x128xi1>, vector<1x128xi32>
    %c0 = arith.constant 0 : index
    %c0_3 = arith.constant 0 : index
    %17 = vector.load %arg4[%c0, %c0_3] : memref<128x128xf32, #tpu.memory_space<vmem>>, vector<128x128xf32>
    %c0_4 = arith.constant 0 : index
    %c0_5 = arith.constant 0 : index
    %18 = vector.load %arg5[%c0_4, %c0_5] : memref<128x128xf32, #tpu.memory_space<vmem>>, vector<128x128xf32>
    %c0_6 = arith.constant 0 : index
    %c0_7 = arith.constant 0 : index
    %19 = vector.load %arg6[%c0_6, %c0_7] : memref<1x128xf32, #tpu.memory_space<vmem>>, vector<1x128xf32>
    %c0_8 = arith.constant 0 : index
    %c0_9 = arith.constant 0 : index
    %20 = vector.load %arg8[%c0_8, %c0_9] : memref<8x1xf32, #tpu.memory_space<vmem>>, vector<8x1xf32>
    %c0_10 = arith.constant 0 : index
    %c0_11 = arith.constant 0 : index
    %c0_12 = arith.constant 0 : index
    %21 = vector.load %arg1[%c0_10, %c0_11, %c0_12] : memref<2x8x128xf32, #tpu.memory_space<vmem>>, vector<1x8x128xf32>
    %22 = vector.shape_cast %21 : vector<1x8x128xf32> to vector<8x128xf32>
    %cst = arith.constant dense<0.000000e+00> : vector<8x128xf32>
    %23 = tpu.matmul %22, %17, %cst {dimension_numbers = #tpu.dot_dimension_numbers<[1], [0], [0], [1], [0, 0, 1, 1], [], []>} : vector<8x128xf32>, vector<128x128xf32>, vector<8x128xf32> -> vector<8x128xf32>
    %c0_13 = arith.constant 0 : index
    %c0_14 = arith.constant 0 : index
    %c0_15 = arith.constant 0 : index
    %24 = vector.load %arg2[%c0_13, %c0_14, %c0_15] : memref<2x8x128xf32, #tpu.memory_space<vmem>>, vector<1x8x128xf32>
    %25 = vector.shape_cast %24 : vector<1x8x128xf32> to vector<8x128xf32>
    %cst_16 = arith.constant dense<0.000000e+00> : vector<8x128xf32>
    %26 = tpu.matmul %25, %18, %cst_16 {dimension_numbers = #tpu.dot_dimension_numbers<[1], [0], [0], [1], [0, 0, 1, 1], [], []>} : vector<8x128xf32>, vector<128x128xf32>, vector<8x128xf32> -> vector<8x128xf32>
    %27 = arith.addf %23, %26 : vector<8x128xf32>
    %28 = vector.broadcast %19 : vector<1x128xf32> to vector<8x128xf32>
    %29 = arith.addf %27, %28 : vector<8x128xf32>
    %30 = arith.negf %29 : vector<8x128xf32>
    %31 = math.exp %30 : vector<8x128xf32>
    %cst_17 = arith.constant 1.000000e+00 : f32
    %32 = vector.broadcast %cst_17 : f32 to vector<8x128xf32>
    %33 = arith.addf %32, %31 : vector<8x128xf32>
    %34 = arith.divf %32, %33 : vector<8x128xf32>
    %35 = math.tanh %29 : vector<8x128xf32>
    %c0_18 = arith.constant 0 : index
    %c0_19 = arith.constant 0 : index
    %c0_20 = arith.constant 0 : index
    %36 = vector.load %arg3[%c0_18, %c0_19, %c0_20] : memref<2x8x146xf32, #tpu.memory_space<vmem>>, vector<1x8x146xf32>
    %37 = vector.shape_cast %36 : vector<1x8x146xf32> to vector<8x146xf32>
    %cst_21 = arith.constant 0.000000e+00 : f32
    %38 = vector.broadcast %cst_21 : f32 to vector<8x128xf32>
    %39 = vector.extract_strided_slice %37 {offsets = [0, 0], sizes = [8, 128], strides = [1, 1]} : vector<8x146xf32> to vector<8x128xf32>
    %c1_i32_22 = arith.constant 1 : i32
    %40 = vector.broadcast %c1_i32_22 : i32 to vector<1x128xi32>
    %41 = arith.cmpi sge, %16, %40 : vector<1x128xi32>
    %cst_23 = arith.constant 0.000000e+00 : f32
    %42 = vector.shape_cast %41 : vector<1x128xi1> to vector<1x128xi1>
    %43 = vector.broadcast %42 : vector<1x128xi1> to vector<8x128xi1>
    %44 = vector.broadcast %cst_23 : f32 to vector<8x128xf32>
    %45 = arith.select %43, %39, %44 : vector<8x128xi1>, vector<8x128xf32>
    %c0_24 = arith.constant 0 : index
    %c0_25 = arith.constant 0 : index
    %c0_26 = arith.constant 0 : index
    %46 = vector.load %arg7[%c0_24, %c0_25, %c0_26] : memref<9x8x8xf32, #tpu.memory_space<vmem>>, vector<1x8x8xf32>
    %47 = vector.shape_cast %46 : vector<1x8x8xf32> to vector<8x8xf32>
    %cst_27 = arith.constant dense<0.000000e+00> : vector<8x128xf32>
    %48 = tpu.matmul %47, %45, %cst_27 {dimension_numbers = #tpu.dot_dimension_numbers<[1], [0], [0], [1], [0, 0, 1, 1], [], []>} : vector<8x8xf32>, vector<8x128xf32>, vector<8x128xf32> -> vector<8x128xf32>
    %49 = arith.addf %38, %48 : vector<8x128xf32>
    %50 = vector.extract_strided_slice %37 {offsets = [0, 1], sizes = [8, 128], strides = [1, 1]} : vector<8x146xf32> to vector<8x128xf32>
    %c1 = arith.constant 1 : index
    %c0_28 = arith.constant 0 : index
    %c0_29 = arith.constant 0 : index
    %51 = vector.load %arg7[%c1, %c0_28, %c0_29] : memref<9x8x8xf32, #tpu.memory_space<vmem>>, vector<1x8x8xf32>
    %52 = vector.shape_cast %51 : vector<1x8x8xf32> to vector<8x8xf32>
    %cst_30 = arith.constant dense<0.000000e+00> : vector<8x128xf32>
    %53 = tpu.matmul %52, %50, %cst_30 {dimension_numbers = #tpu.dot_dimension_numbers<[1], [0], [0], [1], [0, 0, 1, 1], [], []>} : vector<8x8xf32>, vector<8x128xf32>, vector<8x128xf32> -> vector<8x128xf32>
    %54 = arith.addf %49, %53 : vector<8x128xf32>
    %55 = vector.extract_strided_slice %37 {offsets = [0, 2], sizes = [8, 128], strides = [1, 1]} : vector<8x146xf32> to vector<8x128xf32>
    %c7_i32 = arith.constant 7 : i32
    %56 = vector.broadcast %c7_i32 : i32 to vector<1x128xi32>
    %57 = arith.cmpi slt, %16, %56 : vector<1x128xi32>
    %cst_31 = arith.constant 0.000000e+00 : f32
    %58 = vector.shape_cast %57 : vector<1x128xi1> to vector<1x128xi1>
    %59 = vector.broadcast %58 : vector<1x128xi1> to vector<8x128xi1>
    %60 = vector.broadcast %cst_31 : f32 to vector<8x128xf32>
    %61 = arith.select %59, %55, %60 : vector<8x128xi1>, vector<8x128xf32>
    %c2 = arith.constant 2 : index
    %c0_32 = arith.constant 0 : index
    %c0_33 = arith.constant 0 : index
    %62 = vector.load %arg7[%c2, %c0_32, %c0_33] : memref<9x8x8xf32, #tpu.memory_space<vmem>>, vector<1x8x8xf32>
    %63 = vector.shape_cast %62 : vector<1x8x8xf32> to vector<8x8xf32>
    %cst_34 = arith.constant dense<0.000000e+00> : vector<8x128xf32>
    %64 = tpu.matmul %63, %61, %cst_34 {dimension_numbers = #tpu.dot_dimension_numbers<[1], [0], [0], [1], [0, 0, 1, 1], [], []>} : vector<8x8xf32>, vector<8x128xf32>, vector<8x128xf32> -> vector<8x128xf32>
    %65 = arith.addf %54, %64 : vector<8x128xf32>
    %66 = vector.extract_strided_slice %37 {offsets = [0, 8], sizes = [8, 128], strides = [1, 1]} : vector<8x146xf32> to vector<8x128xf32>
    %c1_i32_35 = arith.constant 1 : i32
    %67 = vector.broadcast %c1_i32_35 : i32 to vector<1x128xi32>
    %68 = arith.cmpi sge, %16, %67 : vector<1x128xi32>
    %cst_36 = arith.constant 0.000000e+00 : f32
    %69 = vector.shape_cast %68 : vector<1x128xi1> to vector<1x128xi1>
    %70 = vector.broadcast %69 : vector<1x128xi1> to vector<8x128xi1>
    %71 = vector.broadcast %cst_36 : f32 to vector<8x128xf32>
    %72 = arith.select %70, %66, %71 : vector<8x128xi1>, vector<8x128xf32>
    %c3 = arith.constant 3 : index
    %c0_37 = arith.constant 0 : index
    %c0_38 = arith.constant 0 : index
    %73 = vector.load %arg7[%c3, %c0_37, %c0_38] : memref<9x8x8xf32, #tpu.memory_space<vmem>>, vector<1x8x8xf32>
    %74 = vector.shape_cast %73 : vector<1x8x8xf32> to vector<8x8xf32>
    %cst_39 = arith.constant dense<0.000000e+00> : vector<8x128xf32>
    %75 = tpu.matmul %74, %72, %cst_39 {dimension_numbers = #tpu.dot_dimension_numbers<[1], [0], [0], [1], [0, 0, 1, 1], [], []>} : vector<8x8xf32>, vector<8x128xf32>, vector<8x128xf32> -> vector<8x128xf32>
    %76 = arith.addf %65, %75 : vector<8x128xf32>
    %77 = vector.extract_strided_slice %37 {offsets = [0, 9], sizes = [8, 128], strides = [1, 1]} : vector<8x146xf32> to vector<8x128xf32>
    %c4 = arith.constant 4 : index
    %c0_40 = arith.constant 0 : index
    %c0_41 = arith.constant 0 : index
    %78 = vector.load %arg7[%c4, %c0_40, %c0_41] : memref<9x8x8xf32, #tpu.memory_space<vmem>>, vector<1x8x8xf32>
    %79 = vector.shape_cast %78 : vector<1x8x8xf32> to vector<8x8xf32>
    %cst_42 = arith.constant dense<0.000000e+00> : vector<8x128xf32>
    %80 = tpu.matmul %79, %77, %cst_42 {dimension_numbers = #tpu.dot_dimension_numbers<[1], [0], [0], [1], [0, 0, 1, 1], [], []>} : vector<8x8xf32>, vector<8x128xf32>, vector<8x128xf32> -> vector<8x128xf32>
    %81 = arith.addf %76, %80 : vector<8x128xf32>
    %82 = vector.extract_strided_slice %37 {offsets = [0, 10], sizes = [8, 128], strides = [1, 1]} : vector<8x146xf32> to vector<8x128xf32>
    %c7_i32_43 = arith.constant 7 : i32
    %83 = vector.broadcast %c7_i32_43 : i32 to vector<1x128xi32>
    %84 = arith.cmpi slt, %16, %83 : vector<1x128xi32>
    %cst_44 = arith.constant 0.000000e+00 : f32
    %85 = vector.shape_cast %84 : vector<1x128xi1> to vector<1x128xi1>
    %86 = vector.broadcast %85 : vector<1x128xi1> to vector<8x128xi1>
    %87 = vector.broadcast %cst_44 : f32 to vector<8x128xf32>
    %88 = arith.select %86, %82, %87 : vector<8x128xi1>, vector<8x128xf32>
    %c5 = arith.constant 5 : index
    %c0_45 = arith.constant 0 : index
    %c0_46 = arith.constant 0 : index
    %89 = vector.load %arg7[%c5, %c0_45, %c0_46] : memref<9x8x8xf32, #tpu.memory_space<vmem>>, vector<1x8x8xf32>
    %90 = vector.shape_cast %89 : vector<1x8x8xf32> to vector<8x8xf32>
    %cst_47 = arith.constant dense<0.000000e+00> : vector<8x128xf32>
    %91 = tpu.matmul %90, %88, %cst_47 {dimension_numbers = #tpu.dot_dimension_numbers<[1], [0], [0], [1], [0, 0, 1, 1], [], []>} : vector<8x8xf32>, vector<8x128xf32>, vector<8x128xf32> -> vector<8x128xf32>
    %92 = arith.addf %81, %91 : vector<8x128xf32>
    %93 = vector.extract_strided_slice %37 {offsets = [0, 16], sizes = [8, 128], strides = [1, 1]} : vector<8x146xf32> to vector<8x128xf32>
    %c1_i32_48 = arith.constant 1 : i32
    %94 = vector.broadcast %c1_i32_48 : i32 to vector<1x128xi32>
    %95 = arith.cmpi sge, %16, %94 : vector<1x128xi32>
    %cst_49 = arith.constant 0.000000e+00 : f32
    %96 = vector.shape_cast %95 : vector<1x128xi1> to vector<1x128xi1>
    %97 = vector.broadcast %96 : vector<1x128xi1> to vector<8x128xi1>
    %98 = vector.broadcast %cst_49 : f32 to vector<8x128xf32>
    %99 = arith.select %97, %93, %98 : vector<8x128xi1>, vector<8x128xf32>
    %c6 = arith.constant 6 : index
    %c0_50 = arith.constant 0 : index
    %c0_51 = arith.constant 0 : index
    %100 = vector.load %arg7[%c6, %c0_50, %c0_51] : memref<9x8x8xf32, #tpu.memory_space<vmem>>, vector<1x8x8xf32>
    %101 = vector.shape_cast %100 : vector<1x8x8xf32> to vector<8x8xf32>
    %cst_52 = arith.constant dense<0.000000e+00> : vector<8x128xf32>
    %102 = tpu.matmul %101, %99, %cst_52 {dimension_numbers = #tpu.dot_dimension_numbers<[1], [0], [0], [1], [0, 0, 1, 1], [], []>} : vector<8x8xf32>, vector<8x128xf32>, vector<8x128xf32> -> vector<8x128xf32>
    %103 = arith.addf %92, %102 : vector<8x128xf32>
    %104 = vector.extract_strided_slice %37 {offsets = [0, 17], sizes = [8, 128], strides = [1, 1]} : vector<8x146xf32> to vector<8x128xf32>
    %c7 = arith.constant 7 : index
    %c0_53 = arith.constant 0 : index
    %c0_54 = arith.constant 0 : index
    %105 = vector.load %arg7[%c7, %c0_53, %c0_54] : memref<9x8x8xf32, #tpu.memory_space<vmem>>, vector<1x8x8xf32>
    %106 = vector.shape_cast %105 : vector<1x8x8xf32> to vector<8x8xf32>
    %cst_55 = arith.constant dense<0.000000e+00> : vector<8x128xf32>
    %107 = tpu.matmul %106, %104, %cst_55 {dimension_numbers = #tpu.dot_dimension_numbers<[1], [0], [0], [1], [0, 0, 1, 1], [], []>} : vector<8x8xf32>, vector<8x128xf32>, vector<8x128xf32> -> vector<8x128xf32>
    %108 = arith.addf %103, %107 : vector<8x128xf32>
    %109 = vector.extract_strided_slice %37 {offsets = [0, 18], sizes = [8, 128], strides = [1, 1]} : vector<8x146xf32> to vector<8x128xf32>
    %c7_i32_56 = arith.constant 7 : i32
    %110 = vector.broadcast %c7_i32_56 : i32 to vector<1x128xi32>
    %111 = arith.cmpi slt, %16, %110 : vector<1x128xi32>
    %cst_57 = arith.constant 0.000000e+00 : f32
    %112 = vector.shape_cast %111 : vector<1x128xi1> to vector<1x128xi1>
    %113 = vector.broadcast %112 : vector<1x128xi1> to vector<8x128xi1>
    %114 = vector.broadcast %cst_57 : f32 to vector<8x128xf32>
    %115 = arith.select %113, %109, %114 : vector<8x128xi1>, vector<8x128xf32>
    %c8 = arith.constant 8 : index
    %c0_58 = arith.constant 0 : index
    %c0_59 = arith.constant 0 : index
    %116 = vector.load %arg7[%c8, %c0_58, %c0_59] : memref<9x8x8xf32, #tpu.memory_space<vmem>>, vector<1x8x8xf32>
    %117 = vector.shape_cast %116 : vector<1x8x8xf32> to vector<8x8xf32>
    %cst_60 = arith.constant dense<0.000000e+00> : vector<8x128xf32>
    %118 = tpu.matmul %117, %115, %cst_60 {dimension_numbers = #tpu.dot_dimension_numbers<[1], [0], [0], [1], [0, 0, 1, 1], [], []>} : vector<8x8xf32>, vector<8x128xf32>, vector<8x128xf32> -> vector<8x128xf32>
    %119 = arith.addf %108, %118 : vector<8x128xf32>
    %120 = vector.broadcast %20 : vector<8x1xf32> to vector<8x128xf32>
    %121 = arith.addf %119, %120 : vector<8x128xf32>
    %122 = math.tanh %121 : vector<8x128xf32>
    %123 = arith.addf %35, %122 : vector<8x128xf32>
    %124 = arith.mulf %123, %34 : vector<8x128xf32>
    %c0_61 = arith.constant 0 : index
    %c0_62 = arith.constant 0 : index
    %c0_63 = arith.constant 0 : index
    %125 = vector.load %arg9[%c0_61, %c0_62, %c0_63] : memref<2x8x128xf32, #tpu.memory_space<vmem>>, vector<1x8x128xf32>
    %126 = vector.shape_cast %125 : vector<1x8x128xf32> to vector<8x128xf32>
    %127 = vector.shape_cast %124 : vector<8x128xf32> to vector<1x8x128xf32>
    tpu.vector_store %arg9[%c0_61, %c0_62, %c0_63], %127 {strides = array<i32>} : memref<2x8x128xf32, #tpu.memory_space<vmem>>, vector<1x8x128xf32>,
    %c1_64 = arith.constant 1 : index
    %c0_65 = arith.constant 0 : index
    %c0_66 = arith.constant 0 : index
    %128 = vector.load %arg1[%c1_64, %c0_65, %c0_66] : memref<2x8x128xf32, #tpu.memory_space<vmem>>, vector<1x8x128xf32>
    %129 = vector.shape_cast %128 : vector<1x8x128xf32> to vector<8x128xf32>
    %cst_67 = arith.constant dense<0.000000e+00> : vector<8x128xf32>
    %130 = tpu.matmul %129, %17, %cst_67 {dimension_numbers = #tpu.dot_dimension_numbers<[1], [0], [0], [1], [0, 0, 1, 1], [], []>} : vector<8x128xf32>, vector<128x128xf32>, vector<8x128xf32> -> vector<8x128xf32>
    %c1_68 = arith.constant 1 : index
    %c0_69 = arith.constant 0 : index
    %c0_70 = arith.constant 0 : index
    %131 = vector.load %arg2[%c1_68, %c0_69, %c0_70] : memref<2x8x128xf32, #tpu.memory_space<vmem>>, vector<1x8x128xf32>
    %132 = vector.shape_cast %131 : vector<1x8x128xf32> to vector<8x128xf32>
    %cst_71 = arith.constant dense<0.000000e+00> : vector<8x128xf32>
    %133 = tpu.matmul %132, %18, %cst_71 {dimension_numbers = #tpu.dot_dimension_numbers<[1], [0], [0], [1], [0, 0, 1, 1], [], []>} : vector<8x128xf32>, vector<128x128xf32>, vector<8x128xf32> -> vector<8x128xf32>
    %134 = arith.addf %130, %133 : vector<8x128xf32>
    %135 = vector.broadcast %19 : vector<1x128xf32> to vector<8x128xf32>
    %136 = arith.addf %134, %135 : vector<8x128xf32>
    %137 = arith.negf %136 : vector<8x128xf32>
    %138 = math.exp %137 : vector<8x128xf32>
    %cst_72 = arith.constant 1.000000e+00 : f32
    %139 = vector.broadcast %cst_72 : f32 to vector<8x128xf32>
    %140 = arith.addf %139, %138 : vector<8x128xf32>
    %141 = arith.divf %139, %140 : vector<8x128xf32>
    %142 = math.tanh %136 : vector<8x128xf32>
    %c1_73 = arith.constant 1 : index
    %c0_74 = arith.constant 0 : index
    %c0_75 = arith.constant 0 : index
    %143 = vector.load %arg3[%c1_73, %c0_74, %c0_75] : memref<2x8x146xf32, #tpu.memory_space<vmem>>, vector<1x8x146xf32>
    %144 = vector.shape_cast %143 : vector<1x8x146xf32> to vector<8x146xf32>
    %cst_76 = arith.constant 0.000000e+00 : f32
    %145 = vector.broadcast %cst_76 : f32 to vector<8x128xf32>
    %146 = vector.extract_strided_slice %144 {offsets = [0, 0], sizes = [8, 128], strides = [1, 1]} : vector<8x146xf32> to vector<8x128xf32>
    %c1_i32_77 = arith.constant 1 : i32
    %147 = vector.broadcast %c1_i32_77 : i32 to vector<1x128xi32>
    %148 = arith.cmpi sge, %16, %147 : vector<1x128xi32>
    %cst_78 = arith.constant 0.000000e+00 : f32
    %149 = vector.shape_cast %148 : vector<1x128xi1> to vector<1x128xi1>
    %150 = vector.broadcast %149 : vector<1x128xi1> to vector<8x128xi1>
    %151 = vector.broadcast %cst_78 : f32 to vector<8x128xf32>
    %152 = arith.select %150, %146, %151 : vector<8x128xi1>, vector<8x128xf32>
    %c0_79 = arith.constant 0 : index
    %c0_80 = arith.constant 0 : index
    %c0_81 = arith.constant 0 : index
    %153 = vector.load %arg7[%c0_79, %c0_80, %c0_81] : memref<9x8x8xf32, #tpu.memory_space<vmem>>, vector<1x8x8xf32>
    %154 = vector.shape_cast %153 : vector<1x8x8xf32> to vector<8x8xf32>
    %cst_82 = arith.constant dense<0.000000e+00> : vector<8x128xf32>
    %155 = tpu.matmul %154, %152, %cst_82 {dimension_numbers = #tpu.dot_dimension_numbers<[1], [0], [0], [1], [0, 0, 1, 1], [], []>} : vector<8x8xf32>, vector<8x128xf32>, vector<8x128xf32> -> vector<8x128xf32>
    %156 = arith.addf %145, %155 : vector<8x128xf32>
    %157 = vector.extract_strided_slice %144 {offsets = [0, 1], sizes = [8, 128], strides = [1, 1]} : vector<8x146xf32> to vector<8x128xf32>
    %c1_83 = arith.constant 1 : index
    %c0_84 = arith.constant 0 : index
    %c0_85 = arith.constant 0 : index
    %158 = vector.load %arg7[%c1_83, %c0_84, %c0_85] : memref<9x8x8xf32, #tpu.memory_space<vmem>>, vector<1x8x8xf32>
    %159 = vector.shape_cast %158 : vector<1x8x8xf32> to vector<8x8xf32>
    %cst_86 = arith.constant dense<0.000000e+00> : vector<8x128xf32>
    %160 = tpu.matmul %159, %157, %cst_86 {dimension_numbers = #tpu.dot_dimension_numbers<[1], [0], [0], [1], [0, 0, 1, 1], [], []>} : vector<8x8xf32>, vector<8x128xf32>, vector<8x128xf32> -> vector<8x128xf32>
    %161 = arith.addf %156, %160 : vector<8x128xf32>
    %162 = vector.extract_strided_slice %144 {offsets = [0, 2], sizes = [8, 128], strides = [1, 1]} : vector<8x146xf32> to vector<8x128xf32>
    %c7_i32_87 = arith.constant 7 : i32
    %163 = vector.broadcast %c7_i32_87 : i32 to vector<1x128xi32>
    %164 = arith.cmpi slt, %16, %163 : vector<1x128xi32>
    %cst_88 = arith.constant 0.000000e+00 : f32
    %165 = vector.shape_cast %164 : vector<1x128xi1> to vector<1x128xi1>
    %166 = vector.broadcast %165 : vector<1x128xi1> to vector<8x128xi1>
    %167 = vector.broadcast %cst_88 : f32 to vector<8x128xf32>
    %168 = arith.select %166, %162, %167 : vector<8x128xi1>, vector<8x128xf32>
    %c2_89 = arith.constant 2 : index
    %c0_90 = arith.constant 0 : index
    %c0_91 = arith.constant 0 : index
    %169 = vector.load %arg7[%c2_89, %c0_90, %c0_91] : memref<9x8x8xf32, #tpu.memory_space<vmem>>, vector<1x8x8xf32>
    %170 = vector.shape_cast %169 : vector<1x8x8xf32> to vector<8x8xf32>
    %cst_92 = arith.constant dense<0.000000e+00> : vector<8x128xf32>
    %171 = tpu.matmul %170, %168, %cst_92 {dimension_numbers = #tpu.dot_dimension_numbers<[1], [0], [0], [1], [0, 0, 1, 1], [], []>} : vector<8x8xf32>, vector<8x128xf32>, vector<8x128xf32> -> vector<8x128xf32>
    %172 = arith.addf %161, %171 : vector<8x128xf32>
    %173 = vector.extract_strided_slice %144 {offsets = [0, 8], sizes = [8, 128], strides = [1, 1]} : vector<8x146xf32> to vector<8x128xf32>
    %c1_i32_93 = arith.constant 1 : i32
    %174 = vector.broadcast %c1_i32_93 : i32 to vector<1x128xi32>
    %175 = arith.cmpi sge, %16, %174 : vector<1x128xi32>
    %cst_94 = arith.constant 0.000000e+00 : f32
    %176 = vector.shape_cast %175 : vector<1x128xi1> to vector<1x128xi1>
    %177 = vector.broadcast %176 : vector<1x128xi1> to vector<8x128xi1>
    %178 = vector.broadcast %cst_94 : f32 to vector<8x128xf32>
    %179 = arith.select %177, %173, %178 : vector<8x128xi1>, vector<8x128xf32>
    %c3_95 = arith.constant 3 : index
    %c0_96 = arith.constant 0 : index
    %c0_97 = arith.constant 0 : index
    %180 = vector.load %arg7[%c3_95, %c0_96, %c0_97] : memref<9x8x8xf32, #tpu.memory_space<vmem>>, vector<1x8x8xf32>
    %181 = vector.shape_cast %180 : vector<1x8x8xf32> to vector<8x8xf32>
    %cst_98 = arith.constant dense<0.000000e+00> : vector<8x128xf32>
    %182 = tpu.matmul %181, %179, %cst_98 {dimension_numbers = #tpu.dot_dimension_numbers<[1], [0], [0], [1], [0, 0, 1, 1], [], []>} : vector<8x8xf32>, vector<8x128xf32>, vector<8x128xf32> -> vector<8x128xf32>
    %183 = arith.addf %172, %182 : vector<8x128xf32>
    %184 = vector.extract_strided_slice %144 {offsets = [0, 9], sizes = [8, 128], strides = [1, 1]} : vector<8x146xf32> to vector<8x128xf32>
    %c4_99 = arith.constant 4 : index
    %c0_100 = arith.constant 0 : index
    %c0_101 = arith.constant 0 : index
    %185 = vector.load %arg7[%c4_99, %c0_100, %c0_101] : memref<9x8x8xf32, #tpu.memory_space<vmem>>, vector<1x8x8xf32>
    %186 = vector.shape_cast %185 : vector<1x8x8xf32> to vector<8x8xf32>
    %cst_102 = arith.constant dense<0.000000e+00> : vector<8x128xf32>
    %187 = tpu.matmul %186, %184, %cst_102 {dimension_numbers = #tpu.dot_dimension_numbers<[1], [0], [0], [1], [0, 0, 1, 1], [], []>} : vector<8x8xf32>, vector<8x128xf32>, vector<8x128xf32> -> vector<8x128xf32>
    %188 = arith.addf %183, %187 : vector<8x128xf32>
    %189 = vector.extract_strided_slice %144 {offsets = [0, 10], sizes = [8, 128], strides = [1, 1]} : vector<8x146xf32> to vector<8x128xf32>
    %c7_i32_103 = arith.constant 7 : i32
    %190 = vector.broadcast %c7_i32_103 : i32 to vector<1x128xi32>
    %191 = arith.cmpi slt, %16, %190 : vector<1x128xi32>
    %cst_104 = arith.constant 0.000000e+00 : f32
    %192 = vector.shape_cast %191 : vector<1x128xi1> to vector<1x128xi1>
    %193 = vector.broadcast %192 : vector<1x128xi1> to vector<8x128xi1>
    %194 = vector.broadcast %cst_104 : f32 to vector<8x128xf32>
    %195 = arith.select %193, %189, %194 : vector<8x128xi1>, vector<8x128xf32>
    %c5_105 = arith.constant 5 : index
    %c0_106 = arith.constant 0 : index
    %c0_107 = arith.constant 0 : index
    %196 = vector.load %arg7[%c5_105, %c0_106, %c0_107] : memref<9x8x8xf32, #tpu.memory_space<vmem>>, vector<1x8x8xf32>
    %197 = vector.shape_cast %196 : vector<1x8x8xf32> to vector<8x8xf32>
    %cst_108 = arith.constant dense<0.000000e+00> : vector<8x128xf32>
    %198 = tpu.matmul %197, %195, %cst_108 {dimension_numbers = #tpu.dot_dimension_numbers<[1], [0], [0], [1], [0, 0, 1, 1], [], []>} : vector<8x8xf32>, vector<8x128xf32>, vector<8x128xf32> -> vector<8x128xf32>
    %199 = arith.addf %188, %198 : vector<8x128xf32>
    %200 = vector.extract_strided_slice %144 {offsets = [0, 16], sizes = [8, 128], strides = [1, 1]} : vector<8x146xf32> to vector<8x128xf32>
    %c1_i32_109 = arith.constant 1 : i32
    %201 = vector.broadcast %c1_i32_109 : i32 to vector<1x128xi32>
    %202 = arith.cmpi sge, %16, %201 : vector<1x128xi32>
    %cst_110 = arith.constant 0.000000e+00 : f32
    %203 = vector.shape_cast %202 : vector<1x128xi1> to vector<1x128xi1>
    %204 = vector.broadcast %203 : vector<1x128xi1> to vector<8x128xi1>
    %205 = vector.broadcast %cst_110 : f32 to vector<8x128xf32>
    %206 = arith.select %204, %200, %205 : vector<8x128xi1>, vector<8x128xf32>
    %c6_111 = arith.constant 6 : index
    %c0_112 = arith.constant 0 : index
    %c0_113 = arith.constant 0 : index
    %207 = vector.load %arg7[%c6_111, %c0_112, %c0_113] : memref<9x8x8xf32, #tpu.memory_space<vmem>>, vector<1x8x8xf32>
    %208 = vector.shape_cast %207 : vector<1x8x8xf32> to vector<8x8xf32>
    %cst_114 = arith.constant dense<0.000000e+00> : vector<8x128xf32>
    %209 = tpu.matmul %208, %206, %cst_114 {dimension_numbers = #tpu.dot_dimension_numbers<[1], [0], [0], [1], [0, 0, 1, 1], [], []>} : vector<8x8xf32>, vector<8x128xf32>, vector<8x128xf32> -> vector<8x128xf32>
    %210 = arith.addf %199, %209 : vector<8x128xf32>
    %211 = vector.extract_strided_slice %144 {offsets = [0, 17], sizes = [8, 128], strides = [1, 1]} : vector<8x146xf32> to vector<8x128xf32>
    %c7_115 = arith.constant 7 : index
    %c0_116 = arith.constant 0 : index
    %c0_117 = arith.constant 0 : index
    %212 = vector.load %arg7[%c7_115, %c0_116, %c0_117] : memref<9x8x8xf32, #tpu.memory_space<vmem>>, vector<1x8x8xf32>
    %213 = vector.shape_cast %212 : vector<1x8x8xf32> to vector<8x8xf32>
    %cst_118 = arith.constant dense<0.000000e+00> : vector<8x128xf32>
    %214 = tpu.matmul %213, %211, %cst_118 {dimension_numbers = #tpu.dot_dimension_numbers<[1], [0], [0], [1], [0, 0, 1, 1], [], []>} : vector<8x8xf32>, vector<8x128xf32>, vector<8x128xf32> -> vector<8x128xf32>
    %215 = arith.addf %210, %214 : vector<8x128xf32>
    %216 = vector.extract_strided_slice %144 {offsets = [0, 18], sizes = [8, 128], strides = [1, 1]} : vector<8x146xf32> to vector<8x128xf32>
    %c7_i32_119 = arith.constant 7 : i32
    %217 = vector.broadcast %c7_i32_119 : i32 to vector<1x128xi32>
    %218 = arith.cmpi slt, %16, %217 : vector<1x128xi32>
    %cst_120 = arith.constant 0.000000e+00 : f32
    %219 = vector.shape_cast %218 : vector<1x128xi1> to vector<1x128xi1>
    %220 = vector.broadcast %219 : vector<1x128xi1> to vector<8x128xi1>
    %221 = vector.broadcast %cst_120 : f32 to vector<8x128xf32>
    %222 = arith.select %220, %216, %221 : vector<8x128xi1>, vector<8x128xf32>
    %c8_121 = arith.constant 8 : index
    %c0_122 = arith.constant 0 : index
    %c0_123 = arith.constant 0 : index
    %223 = vector.load %arg7[%c8_121, %c0_122, %c0_123] : memref<9x8x8xf32, #tpu.memory_space<vmem>>, vector<1x8x8xf32>
    %224 = vector.shape_cast %223 : vector<1x8x8xf32> to vector<8x8xf32>
    %cst_124 = arith.constant dense<0.000000e+00> : vector<8x128xf32>
    %225 = tpu.matmul %224, %222, %cst_124 {dimension_numbers = #tpu.dot_dimension_numbers<[1], [0], [0], [1], [0, 0, 1, 1], [], []>} : vector<8x8xf32>, vector<8x128xf32>, vector<8x128xf32> -> vector<8x128xf32>
    %226 = arith.addf %215, %225 : vector<8x128xf32>
    %227 = vector.broadcast %20 : vector<8x1xf32> to vector<8x128xf32>
    %228 = arith.addf %226, %227 : vector<8x128xf32>
    %229 = math.tanh %228 : vector<8x128xf32>
    %230 = arith.addf %142, %229 : vector<8x128xf32>
    %231 = arith.mulf %230, %141 : vector<8x128xf32>
    %c1_125 = arith.constant 1 : index
    %c0_126 = arith.constant 0 : index
    %c0_127 = arith.constant 0 : index
    %232 = vector.load %arg9[%c1_125, %c0_126, %c0_127] : memref<2x8x128xf32, #tpu.memory_space<vmem>>, vector<1x8x128xf32>
    %233 = vector.shape_cast %232 : vector<1x8x128xf32> to vector<8x128xf32>
    %234 = vector.shape_cast %231 : vector<8x128xf32> to vector<1x8x128xf32>
    tpu.vector_store %arg9[%c1_125, %c0_126, %c0_127], %234 {strides = array<i32>} : memref<2x8x128xf32, #tpu.memory_space<vmem>>, vector<1x8x128xf32>,
    return
  }
  func.func @transform_0(%arg0: i32) -> (i32, i32, i32) {
    %c0_i32 = arith.constant 0 : i32
    %c0_i32_0 = arith.constant 0 : i32
    %c0_i32_1 = arith.constant 0 : i32
    %c0_i32_2 = arith.constant 0 : i32
    return %c0_i32, %c0_i32_0, %c0_i32_1 : i32, i32, i32
  }
  func.func @transform_1(%arg0: i32) -> (i32, i32, i32) {
    %c0_i32 = arith.constant 0 : i32
    %c0_i32_0 = arith.constant 0 : i32
    %c0_i32_1 = arith.constant 0 : i32
    %c0_i32_2 = arith.constant 0 : i32
    return %c0_i32, %c0_i32_0, %c0_i32_1 : i32, i32, i32
  }
  func.func @transform_2(%arg0: i32) -> (i32, i32, i32) {
    %c0_i32 = arith.constant 0 : i32
    %c0_i32_0 = arith.constant 0 : i32
    %c0_i32_1 = arith.constant 0 : i32
    %c0_i32_2 = arith.constant 0 : i32
    return %c0_i32, %c0_i32_0, %c0_i32_1 : i32, i32, i32
  }
  func.func @transform_3(%arg0: i32) -> (i32, i32) {
    %c0_i32 = arith.constant 0 : i32
    %c0_i32_0 = arith.constant 0 : i32
    %c0_i32_1 = arith.constant 0 : i32
    return %c0_i32, %c0_i32_0 : i32, i32
  }
  func.func @transform_4(%arg0: i32) -> (i32, i32) {
    %c0_i32 = arith.constant 0 : i32
    %c0_i32_0 = arith.constant 0 : i32
    %c0_i32_1 = arith.constant 0 : i32
    return %c0_i32, %c0_i32_0 : i32, i32
  }
  func.func @transform_5(%arg0: i32) -> (i32, i32) {
    %c0_i32 = arith.constant 0 : i32
    %c0_i32_0 = arith.constant 0 : i32
    %c0_i32_1 = arith.constant 0 : i32
    return %c0_i32, %c0_i32_0 : i32, i32
  }
  func.func @transform_6(%arg0: i32) -> (i32, i32, i32) {
    %c0_i32 = arith.constant 0 : i32
    %c0_i32_0 = arith.constant 0 : i32
    %c0_i32_1 = arith.constant 0 : i32
    %c0_i32_2 = arith.constant 0 : i32
    return %c0_i32, %c0_i32_0, %c0_i32_1 : i32, i32, i32
  }
  func.func @transform_7(%arg0: i32) -> (i32, i32) {
    %c0_i32 = arith.constant 0 : i32
    %c0_i32_0 = arith.constant 0 : i32
    %c0_i32_1 = arith.constant 0 : i32
    return %c0_i32, %c0_i32_0 : i32, i32
  }
  func.func @transform_8(%arg0: i32) -> (i32, i32, i32) {
    %c0_i32 = arith.constant 0 : i32
    %c0_i32_0 = arith.constant 0 : i32
    %c0_i32_1 = arith.constant 0 : i32
    %c0_i32_2 = arith.constant 0 : i32
    return %c0_i32, %c0_i32_0, %c0_i32_1 : i32, i32, i32
  }
}

</mosaic_0001>

<bundles_post_ra>
// kernel: tpu_custom_call.1
= control target key start
LH: loop header
LB: loop body
LE: loop exit
PB: predicated region body
PF: predicated region fallthrough
CT: control target
= control target key end

     0   :  { %13 = vsyncpa [#allocation3], 0  ;;  %s3063_s0 = inlined_call_operand.vmem [shape: f32[2,8,128], index: 0, kind: input, shape index: {}]   ;;  %s3064_s1 = inlined_call_operand.hbm [shape: f32[2,8,128], index: 1, kind: input, shape index: {}]   ;;  %s3065_s2 = inlined_call_operand.hbm [shape: f32[2,8,146], index: 2, kind: input, shape index: {}]   ;;  %s3066_s3 = inlined_call_operand.vmem [shape: f32[128,128], index: 3, kind: input, shape index: {}]   ;;  %s3067_s4 = inlined_call_operand.hbm [shape: f32[128,128], index: 4, kind: input, shape index: {}]   ;;  %s3068_s5 = inlined_call_operand.vmem [shape: f32[1,128], index: 5, kind: input, shape index: {}]   ;;  %s3069_s6 = inlined_call_operand.vmem [shape: f32[9,8,8], index: 6, kind: input, shape index: {}]   ;;  %s3070_s7 = inlined_call_operand.vmem [shape: f32[8,1], index: 7, kind: input, shape index: {}]   ;;  %s3071_s8 = inlined_call_operand.hbm [shape: f32[2,8,128], index: 8, kind: output, shape index: {}]  }
   0x1   :  { %14 = vsyncpa [#allocation6], 0 }
   0x2   :  { %15 = vsyncpa [#allocation4], 0  ;;  %s2453_s27 = smov [#allocation5]  }
   0x3   :  { %s35_s28 = sshll.u32 %s2453_s27, 4  ;;  %s36_s28 = int_to_ptr.vmem [resolvable:$true] %s35_s28 }
   0x4   :  { %s2375_s29 = scalar_lea.vmem %s36_s28, 512  ;;  %p2380_p1 = scmp.lt.s32.totalorder %s36_s28, %s36_s28 }
   0x5   :  { %p2376_p0 = scmp.ne.s32.totalorder %s36_s28, %s2375_s29  ;;  %p2381_p2 = scmp.lt.s32.totalorder %s2375_s29, %s2375_s29 }
   0x7   :  { %p2382_p3 = por %p2381_p2, %p2380_p1 }
   0x9   :  { %p2383_p4 = pnand %p2382_p3, %p2376_p0 }
   0xb   :  { %2386 = shalt.err (!%p2383_p4)
}
   0xc   :  { %s2454_s30 = smov 256   ;;  %s2455_s9 = smov 16  }
   0xd   :  { %41 = dma.hbm_to_vmem [thread:$0]  %s3065_s2, 512, %s36_s28, [#allocation6], %s2454_s30, %s2454_s30, %s2455_s9  }
   0xe   :  { %s2456_s12 = smov [#allocation2]  }
   0xf   :  { %s23_s13 = sshll.u32 %s2456_s12, 4  ;;  %s24_s13 = int_to_ptr.vmem [resolvable:$true] %s23_s13 }
  0x10   :  { %s2395_s14 = scalar_lea.vmem %s24_s13, 256  ;;  %p2400_p6 = scmp.lt.s32.totalorder %s24_s13, %s24_s13 }
  0x11   :  { %p2396_p5 = scmp.ne.s32.totalorder %s24_s13, %s2395_s14  ;;  %p2401_p7 = scmp.lt.s32.totalorder %s2395_s14, %s2395_s14 }
  0x13   :  { %p2402_p8 = por %p2401_p7, %p2400_p6 }
  0x15   :  { %p2403_p9 = pnand %p2402_p8, %p2396_p5 }
  0x17   :  { %2406 = shalt.err (!%p2403_p9)
}
  0x18   :  { %s2457_s15 = smov 128   ;;  %s2458_s16 = smov 8  }
  0x19   :  { %29 = dma.hbm_to_vmem [thread:$0]  %s3064_s1, 256, %s24_s13, [#allocation3], %s2457_s15, %s2457_s15, %s2458_s16  }
  0x1a   :  { %s2459_s2 = smov [#allocation7]  }
  0x1b   :  { %s49_s19 = sshll.u32 %s2459_s2, 4  ;;  %s50_s19 = int_to_ptr.vmem [resolvable:$true] %s49_s19 }
  0x1c   :  { %s2415_s20 = scalar_lea.vmem %s50_s19, 2048  ;;  %p2420_p11 = scmp.lt.s32.totalorder %s50_s19, %s50_s19 }
  0x1d   :  { %p2416_p10 = scmp.ne.s32.totalorder %s50_s19, %s2415_s20  ;;  %p2421_p12 = scmp.lt.s32.totalorder %s2415_s20, %s2415_s20 }
  0x1f   :  { %p2422_p13 = por %p2421_p12, %p2420_p11 }
  0x21   :  { %p2423_p0 = pnand %p2422_p13, %p2416_p10 }
  0x23   :  { %2426 = shalt.err (!%p2423_p0)
}
  0x24   :  { %55 = dma.hbm_to_vmem [thread:$0]  %s3067_s4, 2048, %s50_s19, [#allocation6], %s2457_s15, %s2457_s15, %s2458_s16  }
  0x25   :  { %2447 = dma.done.wait [#allocation3], 256  }
  0x26   :  { %2448 = vsyncadd [#allocation3], 4294967040 }
  0x27   :  { %2449 = dma.done.wait [#allocation6], 2560  }
  0x28   :  { %2450 = vsyncadd [#allocation6], 4294964736  ;;  %v2460_v0 = vmov 0.0   ;;  %vm2461_vm0 = vmmov 0   ;;  %v2538_v1 = vld [vmem:[#allocation5] sm:$0xff]  ;;  %s2462_s1 = smov 126   ;;  %v71_v31 = vlaneseq }
  0x29   :  { %2101 = vmatprep.subr.mxu0 %v2460_v0  ;;  %2136 = vmatprep.subr.mxu1 %v2460_v0  ;;  %s2463_s4 = smov 127   ;;  %v2544_v2 = vld [vmem:[#allocation7 + $0x78] sm:$0xff]  ;;  %v2546_v3 = vld [vmem:[#allocation7 + $0x70] sm:$0xff]  ;;  %v2548_v4 = vld [vmem:[#allocation5 + $0x8] sm:$0xff]  ;;  %s2464_s9 = smov 120   ;;  %vm293_vm2 = vcmask 64512  }
  0x2a   :  { %2133 = vmatprep.mubr.msk.f32.mxu0 %vm2461_vm0, %v2460_v0  ;;  %2168 = vmatprep.mubr.msk.f32.mxu1 %vm2461_vm0, %v2460_v0  ;;  %v2554_v5 = vld [vmem:[%s3066_s3 + $0x78] sm:$0xff]  ;;  %v2561_v6 = vld [vmem:[%s3066_s3 + $0x70] sm:$0xff]  ;;  %v2574_v8 = vld [vmem:[%s3066_s3 + $0x68] sm:$0xff]  ;;  %s2465_s12 = smov 119   ;;  %s2466_s2 = smov 118   ;;  %v72_v35 = vand.u32 127, %v71_v31 }
  0x2b   :  { %443 = vrot.lane.b32.xlu1 %v2538_v1, %s2462_s1  ;;  %286 = vrot.lane.b32.xlu0 %v2538_v1, %s2463_s4  ;;  %v2565_v7 = vld [vmem:[#allocation7 + $0x68] sm:$0xff]  ;;  %v2580_v9 = vld [vmem:[#allocation7 + $0x60] sm:$0xff]  ;;  %v2587_v10 = vld [vmem:[%s3066_s3 + $0x60] sm:$0xff]  ;;  %s2467_s21 = smov 112   ;;  %s2468_s26 = smov 111   ;;  %v2470_v45 = vmov 0  }
  0x2c   :  { %2102 = vmatpush3.msra.mxu0 %v2544_v2  ;;  %2137 = vmatpush3.msra.mxu1 %v2554_v5  ;;  %v2593_v11 = vld [vmem:[#allocation7 + $0x58] sm:$0xff]  ;;  %v2602_v12 = vld [vmem:[%s3066_s3 + $0x58] sm:$0xff]  ;;  %v2606_v13 = vld [vmem:[#allocation7 + $0x50] sm:$0xff]  ;;  %s2469_s29 = smov 110   ;;  %v77_v40 = vand.u32 7, %v72_v35  ;;  %vm290_vm3 = vcmask 1039360  }
  0x2d   :  { %2103 = vmatprep.subr.mxu0 %v2460_v0  ;;  %2138 = vmatprep.subr.mxu1 %v2460_v0  ;;  %v2615_v14 = vld [vmem:[%s3066_s3 + $0x50] sm:$0xff]  ;;  %v2621_v15 = vld [vmem:[#allocation7 + $0x48] sm:$0xff]  ;;  %v2628_v16 = vld [vmem:[%s3066_s3 + $0x48] sm:$0xff]  ;;  %vm447_vm4 = vcmask 1031168   ;;  %vm531_vm6 = vcmask 982016   ;;  %vm617_vm7 = vcmask 973824  }
  0x2e   :  { %2104 = vmatpush3.msra.mxu0 %v2546_v3  ;;  %2139 = vmatpush3.msra.mxu1 %v2561_v6  ;;  %v2634_v17 = vld [vmem:[#allocation7 + $0x40] sm:$0xff]  ;;  %v2643_v18 = vld [vmem:[%s3066_s3 + $0x40] sm:$0xff]  ;;  %v2647_v19 = vld [vmem:[#allocation7 + $0x38] sm:$0xff]  ;;  %vm2763_vm1 = vcmp.ge.s32.totalorder %v77_v40, 1  ;;  %vm2809_vm5 = vcmp.lt.s32.totalorder %v77_v40, 7  ;;  %vm698_vm8 = vcmask 965632  }
  0x2f   :  { %445 = vrot.lane.b32.xlu1 %v2548_v4, %s2462_s1  ;;  %288 = vrot.lane.b32.xlu0 %v2548_v4, %s2463_s4  ;;  %v2656_v20 = vld [vmem:[%s3066_s3 + $0x38] sm:$0xff]  ;;  %v2662_v21 = vld [vmem:[#allocation7 + $0x30] sm:$0xff]  ;;  %v2669_v22 = vld [vmem:[%s3066_s3 + $0x30] sm:$0xff]  ;;  %vm782_vm9 = vcmask 916480   ;;  %vm868_vm10 = vcmask 908288   ;;  %vm949_vm11 = vcmask 900096  }
  0x30   :  { %2105 = vmatprep.subr.mxu0 %v2460_v0  ;;  %2140 = vmatprep.subr.mxu1 %v2460_v0  ;;  %v2675_v23 = vld [vmem:[#allocation7 + $0x28] sm:$0xff]  ;;  %v2684_v24 = vld [vmem:[%s3066_s3 + $0x28] sm:$0xff]  ;;  %v2688_v25 = vld [vmem:[#allocation7 + $0x20] sm:$0xff] }
  0x31   :  { %2106 = vmatpush3.msra.mxu0 %v2565_v7  ;;  %2141 = vmatpush3.msra.mxu1 %v2574_v8  ;;  %v2697_v26 = vld [vmem:[%s3066_s3 + $0x20] sm:$0xff]  ;;  %v1193_v27 = vld [vmem:[#allocation5 + $0x18] sm:$0xff]  ;;  %v2712_v30 = vld [vmem:[%s3066_s3 + $0x18] sm:$0xff] }
  0x32   :  { %2107 = vmatprep.subr.mxu0 %v2460_v0  ;;  %2142 = vmatprep.subr.mxu1 %v2460_v0  ;;  %v2699_v28 = vld [vmem:[#allocation5 + $0x10] sm:$0xff]  ;;  %v2705_v29 = vld [vmem:[#allocation7 + $0x18] sm:$0xff]  ;;  %v2726_v33 = vld [vmem:[%s3066_s3 + $0x10] sm:$0xff] }
  0x33   :  { %529 = vrot.lane.b32.xlu1 %v2548_v4, %s2464_s9  ;;  %527 = vrot.lane.b32.xlu0 %v2538_v1, %s2464_s9  ;;  %v2717_v32 = vld [vmem:[#allocation7 + $0x10] sm:$0xff]  ;;  %v2730_v34 = vld [vmem:[#allocation7 + $0x8] sm:$0xff]  ;;  %v2738_v36 = vld [vmem:[%s3066_s3 + $0x8] sm:$0xff] }
  0x34   :  { %2108 = vmatpush3.msra.mxu0 %v2580_v9  ;;  %2143 = vmatpush3.msra.mxu1 %v2587_v10  ;;  %v2744_v37 = vld [vmem:[#allocation7] sm:$0xff]  ;;  %v120_v38 = vld [vmem:[#allocation2] sm:$0xff]  ;;  %v2806_v50 = vld [vmem:[%s3069_s6 + $0x8] sm:$0xff] }
  0x35   :  { %2109 = vmatprep.subr.mxu0 %v2460_v0  ;;  %2144 = vmatprep.subr.mxu1 %v2460_v0  ;;  %v2751_v39 = vld [vmem:[%s3066_s3] sm:$0xff]  ;;  %v2824_v56 = vld [vmem:[%s3069_s6 + $0x10] sm:$0xff]  ;;  %v2831_v58 = vld [vmem:[%s3069_s6 + $0x18] sm:$0xff] }
  0x36   :  { %2110 = vmatpush3.msra.mxu0 %v2593_v11  ;;  %2145 = vmatpush3.msra.mxu1 %v2602_v12  ;;  %v119_v41 = vld [vmem:[%s3063_s0] sm:$0xff] }
  0x37   :  { %615 = vrot.lane.b32.xlu1 %v2548_v4, %s2465_s12  ;;  %613 = vrot.lane.b32.xlu0 %v2538_v1, %s2465_s12  ;;  %v2773_v43 = vld [vmem:[%s3069_s6] sm:$0xff] }
  0x38   :  { %2111 = vmatprep.subr.mxu0 %v2460_v0  ;;  %2146 = vmatprep.subr.mxu1 %v2460_v0  ;;  %v118_v44 = vld [vmem:[%s3070_s7] sm:$0xff] }
  0x39   :  { %2112 = vmatpush3.msra.mxu0 %v2606_v13  ;;  %2147 = vmatpush3.msra.mxu1 %v2615_v14  ;;  %v2845_v61 = vld [vmem:[%s3069_s6 + $0x20] sm:$0xff] }
  0x3a   :  { %2113 = vmatprep.subr.mxu0 %v2460_v0  ;;  %2148 = vmatprep.subr.mxu1 %v2460_v0 }
  0x3b   :  { %696 = vrot.lane.b32.xlu1 %v2548_v4, %s2466_s2  ;;  %694 = vrot.lane.b32.xlu0 %v2538_v1, %s2466_s2 }
  0x3c   :  { %2114 = vmatpush3.msra.mxu0 %v2621_v15  ;;  %2149 = vmatpush3.msra.mxu1 %v2628_v16 }
  0x3d   :  { %2115 = vmatprep.subr.mxu0 %v2460_v0  ;;  %2150 = vmatprep.subr.mxu1 %v2460_v0 }
  0x3e   :  { %2116 = vmatpush3.msra.mxu0 %v2634_v17  ;;  %2151 = vmatpush3.msra.mxu1 %v2643_v18 }
  0x3f   :  { %780 = vrot.lane.b32.xlu1 %v2548_v4, %s2467_s21  ;;  %778 = vrot.lane.b32.xlu0 %v2538_v1, %s2467_s21 }
  0x40   :  { %2117 = vmatprep.subr.mxu0 %v2460_v0  ;;  %2152 = vmatprep.subr.mxu1 %v2460_v0 }
  0x41   :  { %2118 = vmatpush3.msra.mxu0 %v2647_v19  ;;  %2153 = vmatpush3.msra.mxu1 %v2656_v20 }
  0x42   :  { %2119 = vmatprep.subr.mxu0 %v2460_v0  ;;  %2154 = vmatprep.subr.mxu1 %v2460_v0 }
  0x43   :  { %866 = vrot.lane.b32.xlu1 %v2548_v4, %s2468_s26  ;;  %864 = vrot.lane.b32.xlu0 %v2538_v1, %s2468_s26 }
  0x44   :  { %2120 = vmatpush3.msra.mxu0 %v2662_v21  ;;  %2155 = vmatpush3.msra.mxu1 %v2669_v22 }
  0x45   :  { %2121 = vmatprep.subr.mxu0 %v2460_v0  ;;  %2156 = vmatprep.subr.mxu1 %v2460_v0 }
  0x46   :  { %2122 = vmatpush3.msra.mxu0 %v2675_v23  ;;  %2157 = vmatpush3.msra.mxu1 %v2684_v24 }
  0x47   :  { %947 = vrot.lane.b32.xlu1 %v2548_v4, %s2469_s29  ;;  %945 = vrot.lane.b32.xlu0 %v2538_v1, %s2469_s29  ;;  %v2856_v4 = vld [vmem:[%s3069_s6 + $0x28] sm:$0xff] }
  0x48   :  { %2123 = vmatprep.subr.mxu0 %v2460_v0  ;;  %2158 = vmatprep.subr.mxu1 %v2460_v0 }
  0x49   :  { %2124 = vmatpush3.msra.mxu0 %v2688_v25  ;;  %2159 = vmatpush3.msra.mxu1 %v2697_v26 }
  0x4a   :  { %2125 = vmatprep.subr.mxu0 %v2460_v0  ;;  %2160 = vmatprep.subr.mxu1 %v2460_v0 }
  0x4b   :  { %1201 = vrot.lane.b32.xlu1 %v1193_v27, %s2463_s4  ;;  %1199 = vrot.lane.b32.xlu0 %v2699_v28, %s2463_s4 }
  0x4c   :  { %2126 = vmatpush3.msra.mxu0 %v2705_v29  ;;  %2161 = vmatpush3.msra.mxu1 %v2712_v30 }
  0x4d   :  { %2127 = vmatprep.subr.mxu0 %v2460_v0  ;;  %2162 = vmatprep.subr.mxu1 %v2460_v0 }
  0x4e   :  { %2128 = vmatpush3.msra.mxu0 %v2717_v32  ;;  %2163 = vmatpush3.msra.mxu1 %v2726_v33 }
  0x4f   :  { %1353 = vrot.lane.b32.xlu1 %v1193_v27, %s2462_s1  ;;  %1351 = vrot.lane.b32.xlu0 %v2699_v28, %s2462_s1 }
  0x50   :  { %2129 = vmatprep.subr.mxu0 %v2460_v0  ;;  %2164 = vmatprep.subr.mxu1 %v2460_v0 }
  0x51   :  { %2130 = vmatpush3.msra.mxu0 %v2730_v34  ;;  %2165 = vmatpush3.msra.mxu1 %v2738_v36 }
  0x52   :  { %2131 = vmatprep.subr.mxu0 %v2460_v0  ;;  %2166 = vmatprep.subr.mxu1 %v2460_v0 }
  0x53   :  { %1435 = vrot.lane.b32.xlu1 %v1193_v27, %s2464_s9  ;;  %1433 = vrot.lane.b32.xlu0 %v2699_v28, %s2464_s9 }
  0x54   :  { %2132 = vmatpush3.msra.mxu0 %v2744_v37  ;;  %2167 = vmatpush3.msra.mxu1 %v2751_v39 }
  0x55   :  { %2134 = vmatmul.mubr.f32.vlgmr.msra.gmra.mxu0 %v120_v38  ;;  %2171 = vmatprep.subr.mxu0 %v2460_v0  ;;  %v2869_v38 = vld [vmem:[%s3069_s6 + $0x30] sm:$0xff] }
  0x56   :  { %2169 = vmatmul.mubr.f32.vlgmr.msra.gmra.mxu1 %v119_v41  ;;  %2173 = vmatprep.mubr.msk.f32.mxu0 %vm2461_vm0, %v2460_v0 }
  0x57   :  { %1518 = vrot.lane.b32.xlu1 %v1193_v27, %s2465_s12  ;;  %1516 = vrot.lane.b32.xlu0 %v2699_v28, %s2465_s12 }
  0x58   :  { %2176 = vmatprep.subr.mxu1 %v2460_v0  ;;  %2178 = vmatprep.mubr.msk.f32.mxu1 %vm2461_vm0, %v2460_v0 }
  0x59   :  { %2177 = vmatpush3.msk.msra.mxu1 %vm2763_vm1, %v2538_v1  ;;  %2350 = vset.pattern.permute.xlu0 %v2470_v45  ;;  %v2882_v45 = vld [vmem:[%s3069_s6 + $0x38] sm:$0xff] }
  0x5a   :  { %2186 = vmatprep.subr.mxu1 %v2460_v0  ;;  %2179 = vmatmul.mubr.msk.f32.vlgmr.msra.gmra.mxu1 %vm293_vm2, %v2773_v43 }
  0x5b   :  { %1598 = vrot.lane.b32.xlu1 %v1193_v27, %s2466_s2  ;;  %1596 = vrot.lane.b32.xlu0 %v2699_v28, %s2466_s2 }
  0x5c   :  { %2188 = vmatprep.mubr.msk.f32.mxu1 %vm2461_vm0, %v2460_v0 }
  0x5f   :  { %1680 = vrot.lane.b32.xlu1 %v1193_v27, %s2467_s21  ;;  %1678 = vrot.lane.b32.xlu0 %v2699_v28, %s2467_s21 }
  0x63   :  { %1763 = vrot.lane.b32.xlu1 %v1193_v27, %s2468_s26  ;;  %1761 = vrot.lane.b32.xlu0 %v2699_v28, %s2468_s26 }
  0x67   :  { %1843 = vrot.lane.b32.xlu1 %v1193_v27, %s2469_s29  ;;  %1841 = vrot.lane.b32.xlu0 %v2699_v28, %s2469_s29 }
  0x6b   :  { %1031 = vperm.xlu0 %2350, %v118_v44  }
  0x9d   :  { %v444_v46 = vpop.permute.xlu1 %443  ;;  %v287_v47 = vpop.permute.xlu0 %286 }
  0xa1   :  { %v446_v48 = vpop.permute.xlu1 %445  ;;  %v289_v49 = vpop.permute.xlu0 %288 }
  0xa2   :  { %v291_v51 = vsel %vm290_vm3, %v287_v47, %v289_v49  ;;  %v448_v53 = vsel %vm447_vm4, %v444_v46, %v446_v48  ;;  %v2894_v49 = vld [vmem:[%s3069_s6 + $0x40] sm:$0xff] }
  0xa3   :  { %2172 = vmatpush3.msra.mxu0 %v291_v51 }
  0xa4   :  { %2181 = vmatprep.subr.mxu0 %v2460_v0  ;;  %2174 = vmatmul.mubr.msk.f32.vlgmr.msra.gmra.mxu0 %vm293_vm2, %v2806_v50 }
  0xa5   :  { %v530_v54 = vpop.permute.xlu1 %529  ;;  %v528_v55 = vpop.permute.xlu0 %527  ;;  %2182 = vmatpush3.msk.msra.mxu0 %vm2809_vm5, %v448_v53  ;;  %2183 = vmatprep.mubr.msk.f32.mxu0 %vm2461_vm0, %v2460_v0 }
  0xa6   :  { %v532_v57 = vsel %vm531_vm6, %v528_v55, %v530_v54  ;;  %2191 = vmatprep.subr.mxu0 %v2460_v0 }
  0xa7   :  { %2187 = vmatpush3.msk.msra.mxu1 %vm2763_vm1, %v532_v57 }
  0xa8   :  { %2184 = vmatmul.mubr.msk.f32.vlgmr.msra.gmra.mxu0 %vm293_vm2, %v2824_v56  ;;  %2196 = vmatprep.subr.mxu1 %v2460_v0 }
  0xa9   :  { %v616_v59 = vpop.permute.xlu1 %615  ;;  %v614_v60 = vpop.permute.xlu0 %613  ;;  %2189 = vmatmul.mubr.msk.f32.vlgmr.msra.gmra.mxu1 %vm293_vm2, %v2831_v58  ;;  %2193 = vmatprep.mubr.msk.f32.mxu0 %vm2461_vm0, %v2460_v0 }
  0xaa   :  { %v618_v62 = vsel %vm617_vm7, %v614_v60, %v616_v59  ;;  %2198 = vmatprep.mubr.msk.f32.mxu1 %vm2461_vm0, %v2460_v0 }
  0xab   :  { %2192 = vmatpush3.msra.mxu0 %v618_v62 }
  0xac   :  { %2201 = vmatprep.subr.mxu0 %v2460_v0  ;;  %2194 = vmatmul.mubr.msk.f32.vlgmr.msra.gmra.mxu0 %vm293_vm2, %v2845_v61 }
  0xad   :  { %v697_v63 = vpop.permute.xlu1 %696  ;;  %v695_v1 = vpop.permute.xlu0 %694  ;;  %2203 = vmatprep.mubr.msk.f32.mxu0 %vm2461_vm0, %v2460_v0 }
  0xae   :  { %v699_v27 = vsel %vm698_vm8, %v695_v1, %v697_v63 }
  0xaf   :  { %2197 = vmatpush3.msk.msra.mxu1 %vm2809_vm5, %v699_v27 }
  0xb0   :  { %2199 = vmatmul.mubr.msk.f32.vlgmr.msra.gmra.mxu1 %vm293_vm2, %v2856_v4  ;;  %2206 = vmatprep.subr.mxu1 %v2460_v0 }
  0xb1   :  { %v781_v31 = vpop.permute.xlu1 %780  ;;  %v779_v35 = vpop.permute.xlu0 %778  ;;  %2208 = vmatprep.mubr.msk.f32.mxu1 %vm2461_vm0, %v2460_v0 }
  0xb2   :  { %v783_v40 = vsel %vm782_vm9, %v779_v35, %v781_v31 }
  0xb3   :  { %2202 = vmatpush3.msk.msra.mxu0 %vm2763_vm1, %v783_v40 }
  0xb4   :  { %2204 = vmatmul.mubr.msk.f32.vlgmr.msra.gmra.mxu0 %vm293_vm2, %v2869_v38  ;;  %2211 = vmatprep.subr.mxu0 %v2460_v0 }
  0xb5   :  { %v867_v41 = vpop.permute.xlu1 %866  ;;  %v865_v44 = vpop.permute.xlu0 %864  ;;  %2213 = vmatprep.mubr.msk.f32.mxu0 %vm2461_vm0, %v2460_v0 }
  0xb6   :  { %v869_v46 = vsel %vm868_vm10, %v865_v44, %v867_v41 }
  0xb7   :  { %2207 = vmatpush3.msra.mxu1 %v869_v46 }
  0xb8   :  { %2216 = vmatprep.subr.mxu1 %v2460_v0  ;;  %2209 = vmatmul.mubr.msk.f32.vlgmr.msra.gmra.mxu1 %vm293_vm2, %v2882_v45 }
  0xb9   :  { %v948_v47 = vpop.permute.xlu1 %947  ;;  %v946_v48 = vpop.permute.xlu0 %945  ;;  %2217 = vmatpush3.msra.mxu1 %v2544_v2  ;;  %2248 = vmatprep.mubr.msk.f32.mxu1 %vm2461_vm0, %v2460_v0 }
  0xba   :  { %v950_v51 = vsel %vm949_vm11, %v946_v48, %v948_v47  ;;  %2218 = vmatprep.subr.mxu1 %v2460_v0 }
  0xbb   :  { %2212 = vmatpush3.msk.msra.mxu0 %vm2809_vm5, %v950_v51  ;;  %2219 = vmatpush3.msra.mxu1 %v2546_v3 }
  0xbc   :  { %2214 = vmatmul.mubr.msk.f32.vlgmr.msra.gmra.mxu0 %vm293_vm2, %v2894_v49  ;;  %2220 = vmatprep.subr.mxu1 %v2460_v0 }
  0xbd   :  { %2251 = vmatprep.subr.mxu0 %v2460_v0  ;;  %2221 = vmatpush3.msra.mxu1 %v2565_v7  ;;  %v2908_v2 = vpop.permute.xlu1 %1201  ;;  %v2910_v53 = vpop.permute.xlu0 %1199 }
  0xbe   :  { %2252 = vmatpush3.msra.mxu0 %v2554_v5  ;;  %2222 = vmatprep.subr.mxu1 %v2460_v0 }
  0xbf   :  { %2253 = vmatprep.subr.mxu0 %v2460_v0  ;;  %2223 = vmatpush3.msra.mxu1 %v2580_v9 }
  0xc0   :  { %2254 = vmatpush3.msra.mxu0 %v2561_v6  ;;  %2224 = vmatprep.subr.mxu1 %v2460_v0 }
  0xc1   :  { %2255 = vmatprep.subr.mxu0 %v2460_v0  ;;  %2225 = vmatpush3.msra.mxu1 %v2593_v11  ;;  %v2922_v3 = vpop.permute.xlu1 %1353  ;;  %v2924_v5 = vpop.permute.xlu0 %1351 }
  0xc2   :  { %2256 = vmatpush3.msra.mxu0 %v2574_v8  ;;  %2226 = vmatprep.subr.mxu1 %v2460_v0 }
  0xc3   :  { %2257 = vmatprep.subr.mxu0 %v2460_v0  ;;  %2227 = vmatpush3.msra.mxu1 %v2606_v13  ;;  %v1203_v13 = vsel %vm290_vm3, %v2910_v53, %v2908_v2 }
  0xc4   :  { %2258 = vmatpush3.msra.mxu0 %v2587_v10  ;;  %2228 = vmatprep.subr.mxu1 %v2460_v0 }
  0xc5   :  { %2259 = vmatprep.subr.mxu0 %v2460_v0  ;;  %2229 = vmatpush3.msra.mxu1 %v2621_v15  ;;  %v2938_v6 = vpop.permute.xlu1 %1435  ;;  %v2940_v7 = vpop.permute.xlu0 %1433 }
  0xc6   :  { %2260 = vmatpush3.msra.mxu0 %v2602_v12  ;;  %2230 = vmatprep.subr.mxu1 %v2460_v0  ;;  %v1042_v12 = vld [vmem:[#allocation2 + $0x8] sm:$0xff] }
  0xc7   :  { %2261 = vmatprep.subr.mxu0 %v2460_v0  ;;  %2231 = vmatpush3.msra.mxu1 %v2634_v17  ;;  %v1355_v17 = vsel %vm447_vm4, %v2924_v5, %v2922_v3 }
  0xc8   :  { %2262 = vmatpush3.msra.mxu0 %v2615_v14  ;;  %2232 = vmatprep.subr.mxu1 %v2460_v0  ;;  %v1972_v14 = vld [vmem:[%s3063_s0 + $0x8] sm:$0xff] }
  0xc9   :  { %2263 = vmatprep.subr.mxu0 %v2460_v0  ;;  %2233 = vmatpush3.msra.mxu1 %v2647_v19  ;;  %v1519_v8 = vpop.permute.xlu1 %1518  ;;  %v1517_v9 = vpop.permute.xlu0 %1516 }
  0xca   :  { %2264 = vmatpush3.msra.mxu0 %v2628_v16  ;;  %2234 = vmatprep.subr.mxu1 %v2460_v0 }
  0xcb   :  { %2265 = vmatprep.subr.mxu0 %v2460_v0  ;;  %2235 = vmatpush3.msra.mxu1 %v2662_v21  ;;  %v1520_v21 = vsel %vm617_vm7, %v1517_v9, %v1519_v8 }
  0xcc   :  { %2266 = vmatpush3.msra.mxu0 %v2643_v18  ;;  %2236 = vmatprep.subr.mxu1 %v2460_v0 }
  0xcd   :  { %2267 = vmatprep.subr.mxu0 %v2460_v0  ;;  %2237 = vmatpush3.msra.mxu1 %v2675_v23  ;;  %v1599_v10 = vpop.permute.xlu1 %1598  ;;  %v1597_v11 = vpop.permute.xlu0 %1596 }
  0xce   :  { %2268 = vmatpush3.msra.mxu0 %v2656_v20  ;;  %2238 = vmatprep.subr.mxu1 %v2460_v0  ;;  %v1437_v20 = vsel %vm531_vm6, %v2940_v7, %v2938_v6  ;;  %v1600_v23 = vsel %vm698_vm8, %v1597_v11, %v1599_v10 }
  0xcf   :  { %2269 = vmatprep.subr.mxu0 %v2460_v0  ;;  %2239 = vmatpush3.msra.mxu1 %v2688_v25 }
  0xd0   :  { %2270 = vmatpush3.msra.mxu0 %v2669_v22  ;;  %2240 = vmatprep.subr.mxu1 %v2460_v0 }
  0xd1   :  { %2271 = vmatprep.subr.mxu0 %v2460_v0  ;;  %2241 = vmatpush3.msra.mxu1 %v2705_v29  ;;  %v1681_v15 = vpop.permute.xlu1 %1680  ;;  %v1679_v16 = vpop.permute.xlu0 %1678 }
  0xd2   :  { %2272 = vmatpush3.msra.mxu0 %v2684_v24  ;;  %2242 = vmatprep.subr.mxu1 %v2460_v0  ;;  %v1682_v22 = vsel %vm782_vm9, %v1679_v16, %v1681_v15 }
  0xd3   :  { %2273 = vmatprep.subr.mxu0 %v2460_v0  ;;  %2243 = vmatpush3.msra.mxu1 %v2717_v32 }
  0xd4   :  { %2274 = vmatpush3.msra.mxu0 %v2697_v26  ;;  %2244 = vmatprep.subr.mxu1 %v2460_v0 }
  0xd5   :  { %2275 = vmatprep.subr.mxu0 %v2460_v0  ;;  %2245 = vmatpush3.msra.mxu1 %v2730_v34  ;;  %v1764_v18 = vpop.permute.xlu1 %1763  ;;  %v1762_v19 = vpop.permute.xlu0 %1761 }
  0xd6   :  { %2276 = vmatpush3.msra.mxu0 %v2712_v30  ;;  %2246 = vmatprep.subr.mxu1 %v2460_v0  ;;  %v1765_v26 = vsel %vm868_vm10, %v1762_v19, %v1764_v18 }
  0xd7   :  { %2277 = vmatprep.subr.mxu0 %v2460_v0  ;;  %2247 = vmatpush3.msra.mxu1 %v2744_v37 }
  0xd8   :  { %2278 = vmatpush3.msra.mxu0 %v2726_v33  ;;  %2249 = vmatmul.mubr.f32.vlgmr.msra.gmra.mxu1 %v1042_v12 }
  0xd9   :  { %2279 = vmatprep.subr.mxu0 %v2460_v0  ;;  %2286 = vmatprep.subr.mxu1 %v2460_v0  ;;  %v1844_v24 = vpop.permute.xlu1 %1843  ;;  %v1842_v25 = vpop.permute.xlu0 %1841 }
  0xda   :  { %2280 = vmatpush3.msra.mxu0 %v2738_v36  ;;  %2287 = vmatpush3.msra.mxu1 %v1203_v13 }
  0xdb   :  { %2281 = vmatprep.subr.mxu0 %v2460_v0  ;;  %2283 = vmatprep.mubr.msk.f32.mxu0 %vm2461_vm0, %v2460_v0 }
  0xdc   :  { %2282 = vmatpush3.msra.mxu0 %v2751_v39  ;;  %2288 = vmatprep.mubr.msk.f32.mxu1 %vm2461_vm0, %v2460_v0  ;;  %v1947_v39 = vld [vmem:[%s3068_s5] ss:$0 sm:$0xff]  ;;  %s2471_s5 = smov [#allocation8]  }
  0xdd   :  { %2296 = vmatprep.subr.mxu1 %v2460_v0  ;;  %2284 = vmatmul.mubr.f32.vlgmr.msra.gmra.mxu0 %v1972_v14  ;;  %s1934_s19 = sshll.u32 %s2471_s5, 4  ;;  %s1935_s19 = int_to_ptr.vmem [resolvable:$true] %s1934_s19 }
  0xde   :  { %2289 = vmatmul.mubr.msk.f32.vlgmr.msra.gmra.mxu1 %vm293_vm2, %v2806_v50  ;;  %2291 = vmatprep.subr.mxu0 %v2460_v0  ;;  %s2427_s20 = scalar_lea.vmem %s1935_s19, 256  ;;  %p2432_p2 = scmp.lt.s32.totalorder %s1935_s19, %s1935_s19 }
  0xdf   :  { %2297 = vmatpush3.msk.msra.mxu1 %vm2809_vm5, %v1355_v17  ;;  %2292 = vmatpush3.msk.msra.mxu0 %vm2763_vm1, %v2699_v28  ;;  %v1845_v28 = vsel %vm949_vm11, %v1842_v25, %v1844_v24  ;;  %p2428_p1 = scmp.ne.s32.totalorder %s1935_s19, %s2427_s20  ;;  %p2433_p3 = scmp.lt.s32.totalorder %s2427_s20, %s2427_s20 }
  0xe0   :  { %2293 = vmatprep.mubr.msk.f32.mxu0 %vm2461_vm0, %v2460_v0  ;;  %2298 = vmatprep.mubr.msk.f32.mxu1 %vm2461_vm0, %v2460_v0 }
  0xe1   :  { %2301 = vmatprep.subr.mxu0 %v2460_v0  ;;  %2306 = vmatprep.subr.mxu1 %v2460_v0  ;;  %p2434_p4 = por %p2433_p3, %p2432_p2 }
  0xe2   :  { %2294 = vmatmul.mubr.msk.f32.vlgmr.msra.gmra.mxu0 %vm293_vm2, %v2773_v43  ;;  %2299 = vmatmul.mubr.msk.f32.vlgmr.msra.gmra.mxu1 %vm293_vm2, %v2824_v56 }
  0xe3   :  { %2302 = vmatpush3.msk.msra.mxu0 %vm2763_vm1, %v1437_v20  ;;  %2307 = vmatpush3.msra.mxu1 %v1520_v21  ;;  %p2435_p5 = pnand %p2434_p4, %p2428_p1 }
  0xe4   :  { %2303 = vmatprep.mubr.msk.f32.mxu0 %vm2461_vm0, %v2460_v0  ;;  %2308 = vmatprep.mubr.msk.f32.mxu1 %vm2461_vm0, %v2460_v0 }
  0xe5   :  { %2311 = vmatprep.subr.mxu0 %v2460_v0  ;;  %2316 = vmatprep.subr.mxu1 %v2460_v0 }
  0xe6   :  { %2304 = vmatmul.mubr.msk.f32.vlgmr.msra.gmra.mxu0 %vm293_vm2, %v2831_v58  ;;  %2309 = vmatmul.mubr.msk.f32.vlgmr.msra.gmra.mxu1 %vm293_vm2, %v2845_v61  ;;  %v1032_v46 = vpop.permute.xlu0 %1031 }
  0xe7   :  { %2312 = vmatpush3.msk.msra.mxu0 %vm2809_vm5, %v1600_v23  ;;  %2317 = vmatpush3.msk.msra.mxu1 %vm2763_vm1, %v1682_v22 }
  0xe8   :  { %2313 = vmatprep.mubr.msk.f32.mxu0 %vm2461_vm0, %v2460_v0  ;;  %2321 = vmatprep.subr.mxu0 %v2460_v0 }
  0xe9   :  { %2318 = vmatprep.mubr.msk.f32.mxu1 %vm2461_vm0, %v2460_v0  ;;  %2326 = vmatprep.subr.mxu1 %v2460_v0 }
  0xea   :  { %2314 = vmatmul.mubr.msk.f32.vlgmr.msra.gmra.mxu0 %vm293_vm2, %v2856_v4  ;;  %2319 = vmatmul.mubr.msk.f32.vlgmr.msra.gmra.mxu1 %vm293_vm2, %v2869_v38 }
  0xeb   :  { %2322 = vmatpush3.msra.mxu0 %v1765_v26  ;;  %2323 = vmatprep.mubr.msk.f32.mxu0 %vm2461_vm0, %v2460_v0 }
  0xec   :  { %2327 = vmatpush3.msk.msra.mxu1 %vm2809_vm5, %v1845_v28  ;;  %2328 = vmatprep.mubr.msk.f32.mxu1 %vm2461_vm0, %v2460_v0 }
  0xee   :  { %2324 = vmatmul.mubr.msk.f32.vlgmr.msra.gmra.mxu0 %vm293_vm2, %v2882_v45  ;;  %2329 = vmatmul.mubr.msk.f32.vlgmr.msra.gmra.mxu1 %vm293_vm2, %v2894_v49 }
 0x115   :  { %v187_v29 = vpop.f32.mrf.mxu0 }
 0x116   :  { %v257_v30 = vpop.f32.mrf.mxu1 }
 0x117   :  { %v2135_v32 = vpop.f32.mrf.mxu0  ;;  %v258_v33 = vadd.f32 %v257_v30, %v187_v29 }
 0x118   :  { %v2170_v34 = vpop.f32.mrf.mxu1 }
 0x119   :  { %v267_v50 = vadd.f32 %v1947_v39, %v258_v33 }
 0x11a   :  { %v436_v36 = vpop.f32.mrf.mxu1 }
 0x11b   :  { %v1948_v57 = vmul.f32 -1.442695, %v267_v50 }
 0x11c   :  { %v2180_v37 = vpop.f32.mrf.mxu1 }
 0x11d   :  { %2351 = vpow2.f32 %v1948_v57 }
 0x11e   :  { %2353 = vtanh.f32 %v267_v50 }
 0x12a   :  { %v2352_v44 = vpop.eup %2351 }
 0x12b   :  { %v271_v49 = vadd.f32 1.0, %v2352_v44  ;;  %v2354_v2 = vpop.eup %2353 }
 0x164   :  { %v363_v42 = vpop.f32.mrf.mxu0 }
 0x165   :  { %v437_v43 = vadd.f32 %v436_v36, %v363_v42 }
 0x166   :  { %v2175_v0 = vpop.f32.mrf.mxu0 }
 0x168   :  { %v522_v52 = vpop.f32.mrf.mxu0 }
 0x169   :  { %v526_v54 = vadd.f32 %v522_v52, %v437_v43  ;;  %v606_v55 = vpop.f32.mrf.mxu1 }
 0x16a   :  { %v2185_v56 = vpop.f32.mrf.mxu0 }
 0x16b   :  { %v610_v58 = vadd.f32 %v606_v55, %v526_v54  ;;  %v2190_v59 = vpop.f32.mrf.mxu1 }
 0x16c   :  { %v689_v60 = vpop.f32.mrf.mxu0 }
 0x16d   :  { %v693_v61 = vadd.f32 %v689_v60, %v610_v58 }
 0x16e   :  { %v2195_v62 = vpop.f32.mrf.mxu0 }
 0x170   :  { %v773_v63 = vpop.f32.mrf.mxu1 }
 0x171   :  { %v777_v1 = vadd.f32 %v773_v63, %v693_v61 }
 0x172   :  { %v2200_v4 = vpop.f32.mrf.mxu1 }
 0x174   :  { %v857_v27 = vpop.f32.mrf.mxu0 }
 0x175   :  { %v861_v31 = vadd.f32 %v857_v27, %v777_v1 }
 0x176   :  { %v2205_v35 = vpop.f32.mrf.mxu0 }
 0x178   :  { %v940_v38 = vpop.f32.mrf.mxu1 }
 0x179   :  { %v944_v40 = vadd.f32 %v940_v38, %v861_v31 }
 0x17a   :  { %v2210_v41 = vpop.f32.mrf.mxu1 }
 0x17c   :  { %v1024_v45 = vpop.f32.mrf.mxu0 }
 0x17d   :  { %v1028_v47 = vadd.f32 %v1024_v45, %v944_v40 }
 0x17e   :  { %v2215_v48 = vpop.f32.mrf.mxu0 }
 0x17f   :  { %v1034_v51 = vadd.f32 %v1032_v46, %v1028_v47 }
 0x181   :  { %2355 = vtanh.f32 %v1034_v51 }
 0x182   :  { %2357 = vrcp.f32 %v271_v49 }
 0x18e   :  { %v2356_v53 = vpop.eup %2355 }
 0x18f   :  { %v1036_v3 = vadd.f32 %v2356_v53, %v2354_v2  ;;  %v2358_v5 = vpop.eup %2357 }
 0x191   :  { %v1037_v6 = vmul.f32 %v2358_v5, %v1036_v3 }
 0x193   :  { %1038 = vst [vmem:[#allocation8] sm:$0xff] %v1037_v6 }
 0x198   :  { %v1109_v7 = vpop.f32.mrf.mxu1 }
 0x19a   :  { %v2250_v8 = vpop.f32.mrf.mxu1 }
 0x19d   :  { %v1179_v9 = vpop.f32.mrf.mxu0 }
 0x19e   :  { %v1180_v10 = vadd.f32 %v1179_v9, %v1109_v7  ;;  %v1274_v11 = vpop.f32.mrf.mxu1 }
 0x19f   :  { %v2285_v12 = vpop.f32.mrf.mxu0 }
 0x1a0   :  { %v1183_v13 = vadd.f32 %v1947_v39, %v1180_v10  ;;  %v2290_v14 = vpop.f32.mrf.mxu1 }
 0x1a2   :  { %v1973_v15 = vmul.f32 -1.442695, %v1183_v13  ;;  %v1347_v16 = vpop.f32.mrf.mxu0  ;;  %v1428_v17 = vpop.f32.mrf.mxu1 }
 0x1a3   :  { %v1348_v18 = vadd.f32 %v1347_v16, %v1274_v11 }
 0x1a4   :  { %2359 = vpow2.f32 %v1973_v15  ;;  %v2295_v19 = vpop.f32.mrf.mxu0  ;;  %v2300_v20 = vpop.f32.mrf.mxu1 }
 0x1a5   :  { %v1432_v21 = vadd.f32 %v1428_v17, %v1348_v18  ;;  %2361 = vtanh.f32 %v1183_v13 }
 0x1a6   :  { %v1510_v22 = vpop.f32.mrf.mxu0  ;;  %v1591_v23 = vpop.f32.mrf.mxu1 }
 0x1a7   :  { %v1514_v24 = vadd.f32 %v1510_v22, %v1432_v21 }
 0x1a8   :  { %v2305_v25 = vpop.f32.mrf.mxu0  ;;  %v2310_v26 = vpop.f32.mrf.mxu1 }
 0x1a9   :  { %v1595_v28 = vadd.f32 %v1591_v23, %v1514_v24 }
 0x1aa   :  { %v1673_v29 = vpop.f32.mrf.mxu0  ;;  %v1755_v30 = vpop.f32.mrf.mxu1 }
 0x1ab   :  { %v1677_v32 = vadd.f32 %v1673_v29, %v1595_v28 }
 0x1ac   :  { %v2315_v33 = vpop.f32.mrf.mxu0  ;;  %v2320_v34 = vpop.f32.mrf.mxu1 }
 0x1ad   :  { %v1759_v36 = vadd.f32 %v1755_v30, %v1677_v32 }
 0x1ae   :  { %v1836_v37 = vpop.f32.mrf.mxu0  ;;  %v1918_v39 = vpop.f32.mrf.mxu1 }
 0x1af   :  { %v1840_v42 = vadd.f32 %v1836_v37, %v1759_v36 }
 0x1b0   :  { %v2325_v43 = vpop.f32.mrf.mxu0  ;;  %v2330_v0 = vpop.f32.mrf.mxu1 }
 0x1b1   :  { %v2360_v50 = vpop.eup %2359  ;;  %v1922_v52 = vadd.f32 %v1918_v39, %v1840_v42 }
 0x1b2   :  { %v1187_v54 = vadd.f32 1.0, %v2360_v50  ;;  %v2362_v56 = vpop.eup %2361 }
 0x1b3   :  { %v1923_v55 = vadd.f32 %v1922_v52, %v1032_v46 }
 0x1b5   :  { %2363 = vtanh.f32 %v1923_v55 }
 0x1b6   :  { %2365 = vrcp.f32 %v1187_v54 }
 0x1c2   :  { %v2364_v57 = vpop.eup %2363 }
 0x1c3   :  { %v1925_v58 = vadd.f32 %v2364_v57, %v2362_v56  ;;  %v2366_v59 = vpop.eup %2365 }
 0x1c5   :  { %v1926_v60 = vmul.f32 %v2366_v59, %v1925_v58 }
 0x1c7   :  { %1928 = vst [vmem:[#allocation8 + $0x8] sm:$0xff] %v1926_v60 }
 0x1c8   :  { %2438 = shalt.err (!%p2435_p5)
}
 0x1c9   :  { %1940 = dma.vmem_to_hbm [thread:$0]  %s1935_s19, 256, %s3071_s8, [#allocation4], %s2457_s15, %s2457_s15, %s2458_s16  }
 0x1ca   :  { %2451 = dma.done.wait [#allocation4], 256  }
 0x1cb   :  { %2452 = vsyncadd [#allocation4], 4294967040 }
 0x1cc   :  { %1944 = vsyncpa [#allocation3], 1 }
 0x1cd   :  { %1945 = vsyncpa [#allocation6], 1 }
 0x1ce   :  { %1946 = vsyncpa [#allocation4], 1 }

</bundles_post_ra>
